<compile_context>
chip_gen: v7x
topology: tpu7x:2x2x1
jax: 0.10.0
libtpu: 0.0.40
codegen_flags: <defaults>
</compile_context>

<pallas_src>
import functools

import numpy as np
import jax
import jax.numpy as jnp
from jax import lax
from jax.experimental import pallas as pl
from jax.experimental.pallas import tpu as pltpu


def _round_up(v, m):
    return ((v + m - 1) // m) * m


# --------------------------------------------------------------------------
# Kernel 1: per-group reduction.
#   outputs (per TensorCore partial):
#     sums : (G_pad, F)   group feature sums
#     aux  : (G_pad, 2)   [:, 0] = group counts, [:, 1] = group sum of ||x||^2
# --------------------------------------------------------------------------
def _stats_kernel(gid_ref, x_ref, sums_ref, aux_ref):
    @pl.when(pl.program_id(1) == 0)
    def _():
        sums_ref[...] = jnp.zeros_like(sums_ref)
        aux_ref[...] = jnp.zeros_like(aux_ref)

    gid = gid_ref[...]                                   # (1, tn) int32
    x = x_ref[...]                                       # (tn, F)
    tn = x.shape[0]
    g_pad = sums_ref.shape[0]

    # One-hot built in-register, already transposed: (G_pad, tn).
    oh_t = (gid == lax.broadcasted_iota(jnp.int32, (g_pad, tn), 0)).astype(x.dtype)

    # Per-node [1, ||x||^2] columns built without lane-concat: (tn, 2).
    xf = x.astype(jnp.float32)
    sq = jnp.sum(xf * xf, axis=-1, keepdims=True)        # (tn, 1) f32
    aux = jnp.where(lax.broadcasted_iota(jnp.int32, (tn, 2), 1) == 0,
                    jnp.float32(1.0), sq).astype(x.dtype)

    # Group reductions on the MXU; f32 accumulation in the resident outputs.
    sums_ref[...] += jnp.dot(oh_t, x, preferred_element_type=jnp.float32)
    aux_ref[...] += jnp.dot(oh_t, aux, preferred_element_type=jnp.float32)


# --------------------------------------------------------------------------
# Kernel 2: per-node mix. table rows = [(1-alpha)*group_mean | alpha]
#   out = x * alpha_g + (1-alpha_g)*mean_g ; test row = [0 | 1] -> identity.
# --------------------------------------------------------------------------
def _mix_kernel(gid_ref, x_ref, tab_ref, out_ref):
    gid = gid_ref[...]                                   # (tn, 1) int32
    x = x_ref[...]                                       # (tn, F)
    tn, f = x.shape
    g_pad = tab_ref.shape[0]

    oh = (gid == lax.broadcasted_iota(jnp.int32, (tn, g_pad), 1)).astype(x.dtype)
    gathered = jnp.dot(oh, tab_ref[...], preferred_element_type=jnp.float32)  # (tn, F+1)
    mixed = x.astype(jnp.float32) * gathered[:, f:f + 1] + gathered[:, :f]
    out_ref[...] = mixed.astype(out_ref.dtype)


# --------------------------------------------------------------------------
# Wrapper (= JJ_Norm.forward)
# --------------------------------------------------------------------------
def jj_norm(x, labels, times, num_time, num_label, split, *,
            tile_n=None, num_cores=2):
    N, F = x.shape
    orig_dtype = x.dtype
    T, L = int(num_time), int(num_label)
    TL = T * L
    G = TL + 1                            # last real group = test nodes
    G_pad = _round_up(G + 1, 8)           # >= G+1 -> there is always a dead pad group
    DEAD = G                              # padded rows map here (never read back)

    # Keep bf16 on the wire; otherwise compute in f32. Output keeps input dtype.
    if orig_dtype == jnp.bfloat16:
        cdtype = jnp.bfloat16
    else:
        cdtype = jnp.float32
    labels = labels.astype(jnp.int32)
    times = times.astype(jnp.int32)

    if tile_n is None:
        row_bytes = F * np.dtype(cdtype).itemsize
        cap = (2 * 1024 * 1024) // max(1, row_bytes)          # ~2 MiB per buffered tile
        cap = max(128, min(2048, (cap // 128) * 128))
        tile_n = min(cap, _round_up(pl.cdiv(N, num_cores), 128))
    tile_n = _round_up(int(tile_n), 128)

    N_pad = _round_up(N, num_cores * tile_n)
    tiles_per_core = N_pad // (num_cores * tile_n)

    gid = jnp.where(times < split, times * L + labels, TL).astype(jnp.int32)   # (N,)
    gid_pad = jnp.full((N_pad,), DEAD, jnp.int32).at[:N].set(gid)
    gid_row = gid_pad.reshape(1, N_pad)     # stats kernel: nodes along lanes
    gid_col = gid_pad.reshape(N_pad, 1)     # mix kernel:   nodes along sublanes

    x_c = x.astype(cdtype)
    if N_pad != N:
        x_pad = jnp.zeros((N_pad, F), cdtype).at[:N].set(x_c)
    else:
        x_pad = x_c

    cparams = pltpu.CompilerParams(
        dimension_semantics=("parallel", "arbitrary"),
        vmem_limit_bytes=32 * 1024 * 1024)

    # ---- Pallas stats kernel: per-TensorCore partial group sums ------------------
    sums_p, aux_p = pl.pallas_call(
        _stats_kernel,
        out_shape=(jax.ShapeDtypeStruct((num_cores, G_pad, F), jnp.float32),
                   jax.ShapeDtypeStruct((num_cores, G_pad, 2), jnp.float32)),
        grid_spec=pltpu.PrefetchScalarGridSpec(
            num_scalar_prefetch=0,
            grid=(num_cores, tiles_per_core),
            in_specs=[
                pl.BlockSpec((1, tile_n),
                             lambda c, i: (0, c * tiles_per_core + i)),
                pl.BlockSpec((tile_n, F),
                             lambda c, i: (c * tiles_per_core + i, 0)),
            ],
            out_specs=[
                pl.BlockSpec((None, G_pad, F), lambda c, i: (c, 0, 0)),
                pl.BlockSpec((None, G_pad, 2), lambda c, i: (c, 0, 0)),
            ]),
        compiler_params=cparams,
    )(gid_row, x_pad)

    # ---- tiny per-(time,label) statistics -> alpha (plain JAX glue) --------------
    sums = jnp.sum(sums_p, axis=0)            # (G_pad, F)
    aux = jnp.sum(aux_p, axis=0)              # (G_pad, 2)
    cnts = aux[:, 0]
    sumsq = aux[:, 1]

    sums_tl = sums[:TL].reshape(T, L, F)
    cnts_tl = cnts[:TL].reshape(T, L)
    sumsq_tl = sumsq[:TL].reshape(T, L)
    test_sum, test_cnt, test_sumsq = sums[TL], cnts[TL], sumsq[TL]

    mean_tl = sums_tl / jnp.maximum(1.0, cnts_tl)[..., None]                 # train_mean
    time_cnt = jnp.sum(cnts_tl, axis=1)                                      # (T,)
    time_mean = jnp.sum(sums_tl, axis=1) / jnp.maximum(1.0, time_cnt)[:, None]
    test_mean = test_sum / jnp.maximum(1.0, test_cnt)
    test_var = jnp.maximum(0.0, test_sumsq - test_cnt * jnp.sum(test_mean * test_mean)) \
               / jnp.maximum(1.0, test_cnt - 1.0)

    # sum_u ||x_u - mean||^2 = sumsq - cnt*||mean||^2 per group, summed over labels
    rsq = jnp.sum(jnp.maximum(
        0.0, sumsq_tl - cnts_tl * jnp.sum(mean_tl * mean_tl, axis=-1)), axis=1)
    msq = jnp.sum(cnts_tl * jnp.sum((mean_tl - time_mean[:, None, :]) ** 2, axis=-1),
                  axis=1)
    denom = jnp.maximum(1.0, time_cnt - 1.0)
    alpha_sq = (test_var - msq / denom) / jnp.maximum(1e-6, rsq / denom)
    alpha = jnp.where(alpha_sq > 0.0, jnp.sqrt(jnp.maximum(alpha_sq, 0.0)), 0.0)
    alpha = jnp.where(jnp.arange(T) < split, alpha, 0.0)   # only t < split is ever used

    # mix table: train rows [(1-alpha)*mean | alpha], test row [0 | 1], pad rows 0
    alpha_g = jnp.repeat(alpha, L)                                           # (TL,)
    table = jnp.zeros((G_pad, F + 1), jnp.float32)
    table = table.at[:TL, :F].set((1.0 - alpha_g)[:, None] * mean_tl.reshape(TL, F))
    table = table.at[:TL, F].set(alpha_g)
    table = table.at[TL, F].set(1.0)
    table = table.astype(cdtype)

    # ---- Pallas mix kernel --------------------------------------------------------
    out_pad = pl.pallas_call(
        _mix_kernel,
        out_shape=jax.ShapeDtypeStruct((N_pad, F), orig_dtype),
        grid_spec=pltpu.PrefetchScalarGridSpec(
            num_scalar_prefetch=0,
            grid=(N_pad // tile_n,),
            in_specs=[
                pl.BlockSpec((tile_n, 1), lambda i: (i, 0)),
                pl.BlockSpec((tile_n, F), lambda i: (i, 0)),
                pl.BlockSpec((G_pad, F + 1), lambda i: (0, 0)),
            ],
            out_specs=pl.BlockSpec((tile_n, F), lambda i: (i, 0))),
        compiler_params=pltpu.CompilerParams(
            dimension_semantics=("parallel",),
            vmem_limit_bytes=32 * 1024 * 1024),
    )(gid_col, x_pad, table)

    return out_pad[:N] if N_pad != N else out_pad


# --------------------------------------------------------------------------
# Loop-for-loop NumPy reference mirroring the PyTorch forward (for checking)
# --------------------------------------------------------------------------
def ref_forward(x, labels, times, num_time, num_label, split):
    x = np.asarray(x, dtype=np.float64)
    labels = np.asarray(labels)
    times = np.asarray(times)
    N, F = x.shape
    train_idx = np.nonzero(times < split)[0]
    test_idx = np.nonzero(times >= split)[0]
    clone_x = x.copy()
    train_mean = np.zeros((num_time, num_label, F))
    train_cnt = np.zeros((num_time, num_label))
    train_time_mean = np.zeros((num_time, F))
    train_time_cnt = np.zeros(num_time)
    test_cnt = 0.0
    test_mean = np.zeros(F)
    for u in test_idx:
        test_cnt += 1
        test_mean += x[u]
    for u in train_idx:
        t = times[u]
        train_time_cnt[t] += 1
        train_cnt[t, labels[u]] += 1
        train_mean[t, labels[u]] += x[u]
    for t in range(num_time):
        for l in range(num_label):
            train_time_mean[t] += train_mean[t, l]
            train_mean[t, l] = train_mean[t, l] / max(1.0, train_cnt[t, l])
        train_time_mean[t] /= max(1.0, train_time_cnt[t])
    test_mean /= max(1.0, test_cnt)
    test_var = 0.0
    rsq = np.zeros(num_time)
    msq = np.zeros(num_time)
    for u in test_idx:
        test_var += np.sum((x[u] - test_mean) ** 2)
    for u in train_idx:
        t = times[u]
        msq[t] += np.sum((train_mean[t, labels[u]] - train_time_mean[t]) ** 2)
        rsq[t] += np.sum((x[u] - train_mean[t, labels[u]]) ** 2)
    test_var /= max(1.0, test_cnt - 1)
    alpha = np.ones(split)
    for t in range(split):
        msq[t] /= max(1.0, train_time_cnt[t] - 1)
        rsq[t] /= max(1.0, train_time_cnt[t] - 1)
        a2 = (test_var - msq[t]) / max(1e-6, rsq[t])
        alpha[t] = np.sqrt(a2) if a2 > 0 else 0.0
    for u in train_idx:
        t = times[u]
        clone_x[u] = alpha[t] * x[u] + (1 - alpha[t]) * train_mean[t, labels[u]]
    return clone_x


if __name__ == "__main__":
    key = jax.random.PRNGKey(0)
    N, F = 32, 16
    num_time, num_label, split = 4, 3, 2

    kx, kl, kt = jax.random.split(key, 3)
    x = jax.random.normal(kx, (N, F), dtype=jnp.float32)
    labels = jax.random.randint(kl, (N,), 0, num_label, dtype=jnp.int32)
    times = jax.random.randint(kt, (N,), 0, num_time, dtype=jnp.int32)

    fn = jax.jit(functools.partial(jj_norm, num_time=num_time,
                                   num_label=num_label, split=split))
    out = fn(x, labels, times)
    out = jax.block_until_ready(out)

    ref = ref_forward(np.asarray(x), np.asarray(labels), np.asarray(times),
                      num_time, num_label, split)
    assert out.shape == x.shape and out.dtype == x.dtype
    np.testing.assert_allclose(np.asarray(out, np.float64), ref,
                               atol=2e-3, rtol=2e-3)
    print("KERNEL_OK")
</pallas_src>

<mosaic_0001>
module attributes {stable_mosaic.version = 11 : i64} {
  func.func @_mix_kernel(%arg0: i32, %arg1: memref<128x1xi32, #tpu.memory_space<vmem>>, %arg2: memref<128x16xf32, #tpu.memory_space<vmem>>, %arg3: memref<16x17xf32, #tpu.memory_space<vmem>>, %arg4: memref<128x16xf32, #tpu.memory_space<vmem>>) attributes {dimension_semantics = [#tpu.dimension_semantics<parallel>], iteration_bounds = array<i64: 2>, scalar_prefetch = 0 : i64, scratch_operands = 0 : i64, tpu.core_type = #tpu.core_type<tc>, window_params = [{transform_indices = @transform_0, window_bounds = array<i64: 128, 1>}, {transform_indices = @transform_1, window_bounds = array<i64: 128, 16>}, {pipeline_mode = #tpu.pipeline_mode<synchronous>, transform_indices = @transform_2, window_bounds = array<i64: 16, 17>}, {transform_indices = @transform_3, window_bounds = array<i64: 128, 16>}]} {
    %c0 = arith.constant 0 : index
    %c0_0 = arith.constant 0 : index
    %0 = vector.load %arg1[%c0, %c0_0] : memref<128x1xi32, #tpu.memory_space<vmem>>, vector<128x1xi32>
    %c0_1 = arith.constant 0 : index
    %c0_2 = arith.constant 0 : index
    %1 = vector.load %arg2[%c0_1, %c0_2] : memref<128x16xf32, #tpu.memory_space<vmem>>, vector<128x16xf32>
    %2 = tpu.iota {dimensions = array<i32: 1>} : vector<128x16xi32>
    %3 = vector.broadcast %0 : vector<128x1xi32> to vector<128x16xi32>
    %4 = arith.cmpi eq, %3, %2 : vector<128x16xi32>
    %5 = arith.extui %4 : vector<128x16xi1> to vector<128x16xi32>
    %6 = arith.sitofp %5 : vector<128x16xi32> to vector<128x16xf32>
    %c0_3 = arith.constant 0 : index
    %c0_4 = arith.constant 0 : index
    %7 = vector.load %arg3[%c0_3, %c0_4] : memref<16x17xf32, #tpu.memory_space<vmem>>, vector<16x17xf32>
    %cst = arith.constant dense<0.000000e+00> : vector<128x17xf32>
    %8 = tpu.matmul %6, %7, %cst {dimension_numbers = #tpu.dot_dimension_numbers<[1], [0], [0], [1], [0, 0, 1, 1], [], []>} : vector<128x16xf32>, vector<16x17xf32>, vector<128x17xf32> -> vector<128x17xf32>
    %9 = vector.extract_strided_slice %8 {offsets = [0, 16], sizes = [128, 1], strides = [1, 1]} : vector<128x17xf32> to vector<128x1xf32>
    %10 = vector.broadcast %9 : vector<128x1xf32> to vector<128x16xf32>
    %11 = arith.mulf %1, %10 : vector<128x16xf32>
    %12 = vector.extract_strided_slice %8 {offsets = [0, 0], sizes = [128, 16], strides = [1, 1]} : vector<128x17xf32> to vector<128x16xf32>
    %13 = arith.addf %11, %12 : vector<128x16xf32>
    %c0_5 = arith.constant 0 : index
    %c0_6 = arith.constant 0 : index
    %14 = vector.load %arg4[%c0_5, %c0_6] : memref<128x16xf32, #tpu.memory_space<vmem>>, vector<128x16xf32>
    tpu.vector_store %arg4[%c0_5, %c0_6], %13 {strides = array<i32>} : memref<128x16xf32, #tpu.memory_space<vmem>>, vector<128x16xf32>,
    return
  }
  func.func @transform_0(%arg0: i32) -> (i32, i32) {
    %c0_i32 = arith.constant 0 : i32
    %c0_i32_0 = arith.constant 0 : i32
    return %arg0, %c0_i32 : i32, i32
  }
  func.func @transform_1(%arg0: i32) -> (i32, i32) {
    %c0_i32 = arith.constant 0 : i32
    %c0_i32_0 = arith.constant 0 : i32
    return %arg0, %c0_i32 : i32, i32
  }
  func.func @transform_2(%arg0: i32) -> (i32, i32) {
    %c0_i32 = arith.constant 0 : i32
    %c0_i32_0 = arith.constant 0 : i32
    %c0_i32_1 = arith.constant 0 : i32
    return %c0_i32, %c0_i32_0 : i32, i32
  }
  func.func @transform_3(%arg0: i32) -> (i32, i32) {
    %c0_i32 = arith.constant 0 : i32
    %c0_i32_0 = arith.constant 0 : i32
    return %arg0, %c0_i32 : i32, i32
  }
}

module attributes {stable_mosaic.version = 11 : i64} {
  func.func @_stats_kernel(%arg0: i32, %arg1: i32, %arg2: memref<1x128xi32, #tpu.memory_space<vmem>>, %arg3: memref<128x16xf32, #tpu.memory_space<vmem>>, %arg4: memref<1x16x16xf32, #tpu.memory_space<vmem>>, %arg5: memref<1x16x2xf32, #tpu.memory_space<vmem>>) attributes {dimension_semantics = [#tpu.dimension_semantics<parallel>, #tpu.dimension_semantics<arbitrary>], iteration_bounds = array<i64: 2, 1>, scalar_prefetch = 0 : i64, scratch_operands = 0 : i64, tpu.core_type = #tpu.core_type<tc>, window_params = [{transform_indices = @transform_0, window_bounds = array<i64: 1, 128>}, {transform_indices = @transform_1, window_bounds = array<i64: 128, 16>}, {transform_indices = @transform_2, window_bounds = array<i64: 1, 16, 16>}, {transform_indices = @transform_3, window_bounds = array<i64: 1, 16, 2>}]} {
    %c0_i32 = arith.constant 0 : i32
    %0 = arith.cmpi eq, %arg1, %c0_i32 : i32
    %1 = arith.extui %0 : i1 to i32
    %c0_i32_0 = arith.constant 0 : i32
    %2 = arith.cmpi ne, %1, %c0_i32_0 : i32
    scf.if %2 {
      %cst_20 = arith.constant 0.000000e+00 : f32
      %34 = vector.broadcast %cst_20 : f32 to vector<16x16xf32>
      %c0_21 = arith.constant 0 : index
      %c0_22 = arith.constant 0 : index
      %c0_23 = arith.constant 0 : index
      %35 = vector.load %arg4[%c0_21, %c0_22, %c0_23] : memref<1x16x16xf32, #tpu.memory_space<vmem>>, vector<1x16x16xf32>
      %36 = vector.shape_cast %35 : vector<1x16x16xf32> to vector<16x16xf32>
      %37 = vector.shape_cast %34 : vector<16x16xf32> to vector<1x16x16xf32>
      tpu.vector_store %arg4[%c0_21, %c0_22, %c0_23], %37 {strides = array<i32>} : memref<1x16x16xf32, #tpu.memory_space<vmem>>, vector<1x16x16xf32>,
      %cst_24 = arith.constant 0.000000e+00 : f32
      %38 = vector.broadcast %cst_24 : f32 to vector<16x2xf32>
      %c0_25 = arith.constant 0 : index
      %c0_26 = arith.constant 0 : index
      %c0_27 = arith.constant 0 : index
      %39 = vector.load %arg5[%c0_25, %c0_26, %c0_27] : memref<1x16x2xf32, #tpu.memory_space<vmem>>, vector<1x16x2xf32>
      %40 = vector.shape_cast %39 : vector<1x16x2xf32> to vector<16x2xf32>
      %41 = vector.shape_cast %38 : vector<16x2xf32> to vector<1x16x2xf32>
      tpu.vector_store %arg5[%c0_25, %c0_26, %c0_27], %41 {strides = array<i32>} : memref<1x16x2xf32, #tpu.memory_space<vmem>>, vector<1x16x2xf32>,
    } else {
    }
    %c0 = arith.constant 0 : index
    %c0_1 = arith.constant 0 : index
    %3 = vector.load %arg2[%c0, %c0_1] : memref<1x128xi32, #tpu.memory_space<vmem>>, vector<1x128xi32>
    %c0_2 = arith.constant 0 : index
    %c0_3 = arith.constant 0 : index
    %4 = vector.load %arg3[%c0_2, %c0_3] : memref<128x16xf32, #tpu.memory_space<vmem>>, vector<128x16xf32>
    %5 = tpu.iota {dimensions = array<i32: 0>} : vector<16x128xi32>
    %6 = vector.broadcast %3 : vector<1x128xi32> to vector<16x128xi32>
    %7 = arith.cmpi eq, %6, %5 : vector<16x128xi32>
    %8 = arith.extui %7 : vector<16x128xi1> to vector<16x128xi32>
    %9 = arith.sitofp %8 : vector<16x128xi32> to vector<16x128xf32>
    %10 = arith.mulf %4, %4 : vector<128x16xf32>
    %cst = arith.constant dense<0.000000e+00> : vector<128xf32>
    %11 = vector.multi_reduction <add>, %10, %cst [1] : vector<128x16xf32> to vector<128xf32>
    %12 = vector.shape_cast %11 : vector<128xf32> to vector<128x1xf32>
    %13 = tpu.iota {dimensions = array<i32: 1>} : vector<128x2xi32>
    %c0_i32_4 = arith.constant 0 : i32
    %14 = vector.broadcast %c0_i32_4 : i32 to vector<128x2xi32>
    %15 = arith.cmpi eq, %13, %14 : vector<128x2xi32>
    %cst_5 = arith.constant 1.000000e+00 : f32
    %16 = vector.broadcast %cst_5 : f32 to vector<128x2xf32>
    %17 = vector.shape_cast %12 : vector<128x1xf32> to vector<128x1xf32>
    %18 = vector.broadcast %17 : vector<128x1xf32> to vector<128x2xf32>
    %19 = arith.select %15, %16, %18 : vector<128x2xi1>, vector<128x2xf32>
    %c0_6 = arith.constant 0 : index
    %c0_7 = arith.constant 0 : index
    %c0_8 = arith.constant 0 : index
    %20 = vector.load %arg4[%c0_6, %c0_7, %c0_8] : memref<1x16x16xf32, #tpu.memory_space<vmem>>, vector<1x16x16xf32>
    %21 = vector.shape_cast %20 : vector<1x16x16xf32> to vector<16x16xf32>
    %cst_9 = arith.constant dense<0.000000e+00> : vector<16x16xf32>
    %22 = tpu.matmul %9, %4, %cst_9 {dimension_numbers = #tpu.dot_dimension_numbers<[1], [0], [0], [1], [0, 0, 1, 1], [], []>} : vector<16x128xf32>, vector<128x16xf32>, vector<16x16xf32> -> vector<16x16xf32>
    %23 = arith.addf %21, %22 : vector<16x16xf32>
    %c0_10 = arith.constant 0 : index
    %c0_11 = arith.constant 0 : index
    %c0_12 = arith.constant 0 : index
    %24 = vector.load %arg4[%c0_10, %c0_11, %c0_12] : memref<1x16x16xf32, #tpu.memory_space<vmem>>, vector<1x16x16xf32>
    %25 = vector.shape_cast %24 : vector<1x16x16xf32> to vector<16x16xf32>
    %26 = vector.shape_cast %23 : vector<16x16xf32> to vector<1x16x16xf32>
    tpu.vector_store %arg4[%c0_10, %c0_11, %c0_12], %26 {strides = array<i32>} : memref<1x16x16xf32, #tpu.memory_space<vmem>>, vector<1x16x16xf32>,
    %c0_13 = arith.constant 0 : index
    %c0_14 = arith.constant 0 : index
    %c0_15 = arith.constant 0 : index
    %27 = vector.load %arg5[%c0_13, %c0_14, %c0_15] : memref<1x16x2xf32, #tpu.memory_space<vmem>>, vector<1x16x2xf32>
    %28 = vector.shape_cast %27 : vector<1x16x2xf32> to vector<16x2xf32>
    %cst_16 = arith.constant dense<0.000000e+00> : vector<16x2xf32>
    %29 = tpu.matmul %9, %19, %cst_16 {dimension_numbers = #tpu.dot_dimension_numbers<[1], [0], [0], [1], [0, 0, 1, 1], [], []>} : vector<16x128xf32>, vector<128x2xf32>, vector<16x2xf32> -> vector<16x2xf32>
    %30 = arith.addf %28, %29 : vector<16x2xf32>
    %c0_17 = arith.constant 0 : index
    %c0_18 = arith.constant 0 : index
    %c0_19 = arith.constant 0 : index
    %31 = vector.load %arg5[%c0_17, %c0_18, %c0_19] : memref<1x16x2xf32, #tpu.memory_space<vmem>>, vector<1x16x2xf32>
    %32 = vector.shape_cast %31 : vector<1x16x2xf32> to vector<16x2xf32>
    %33 = vector.shape_cast %30 : vector<16x2xf32> to vector<1x16x2xf32>
    tpu.vector_store %arg5[%c0_17, %c0_18, %c0_19], %33 {strides = array<i32>} : memref<1x16x2xf32, #tpu.memory_space<vmem>>, vector<1x16x2xf32>,
    return
  }
  func.func @transform_0(%arg0: i32, %arg1: i32) -> (i32, i32) {
    %c1_i32 = arith.constant 1 : i32
    %0 = arith.muli %arg0, %c1_i32 : i32
    %1 = arith.addi %0, %arg1 : i32
    %c0_i32 = arith.constant 0 : i32
    %c0_i32_0 = arith.constant 0 : i32
    return %c0_i32, %1 : i32, i32
  }
  func.func @transform_1(%arg0: i32, %arg1: i32) -> (i32, i32) {
    %c1_i32 = arith.constant 1 : i32
    %0 = arith.muli %arg0, %c1_i32 : i32
    %1 = arith.addi %0, %arg1 : i32
    %c0_i32 = arith.constant 0 : i32
    %c0_i32_0 = arith.constant 0 : i32
    return %1, %c0_i32 : i32, i32
  }
  func.func @transform_2(%arg0: i32, %arg1: i32) -> (i32, i32, i32) {
    %c0_i32 = arith.constant 0 : i32
    %c0_i32_0 = arith.constant 0 : i32
    %c0_i32_1 = arith.constant 0 : i32
    return %arg0, %c0_i32, %c0_i32_0 : i32, i32, i32
  }
  func.func @transform_3(%arg0: i32, %arg1: i32) -> (i32, i32, i32) {
    %c0_i32 = arith.constant 0 : i32
    %c0_i32_0 = arith.constant 0 : i32
    %c0_i32_1 = arith.constant 0 : i32
    return %arg0, %c0_i32, %c0_i32_0 : i32, i32, i32
  }
}

</mosaic_0001>

<bundles_post_ra>
// kernel: jj_norm.3
= control target key start
LH: loop header
LB: loop body
LE: loop exit
PB: predicated region body
PF: predicated region fallthrough
CT: control target
= control target key end

     0   :  { %s861_s12 = smov 0   ;;  %s1014_s0 = inlined_call_operand.vmem [shape: s32[256,1], index: 0, kind: input, shape index: {}]   ;;  %s1015_s1 = inlined_call_operand.vmem [shape: f32[256,16], index: 1, kind: input, shape index: {}]   ;;  %s1016_s2 = inlined_call_operand.vmem [shape: f32[16,17], index: 2, kind: input, shape index: {}]   ;;  %s1017_s3 = inlined_call_operand.vmem [shape: f32[256,16], index: 3, kind: output, shape index: {}]  }
   0x1 LB: > { %s718_s13 = sadd.s32 4294967295, %s836_s12   ;;  %p722_p0 = scmp.ge.s32.totalorder %s836_s12, 1  ;;  %s836_s12 = sphi %s861_s12, %s13_s12  }
   0x2   : > { %p149_p1 = scmp.lt.s32.totalorder %s836_s12, 3 }
   0x4   : > { %p150_p2 = pnand %p722_p0, %p149_p1 }
   0x5   : > { %s723_s14 = sshll.u32 (!%p150_p2), %s718_s13, 4  ;;  %v326_v0 = vld [vmem:[%s1016_s2] sm:$0xff] (!%p150_p2)  ;;  %v327_v1 = vld [vmem:[%s1016_s2 + $0x8] sm:$0xff] (!%p150_p2)  ;;  %v838_v2 = vmov (!%p150_p2), 0   ;;  %v839_v20 = vmov (!%p150_p2), 16   ;;  %v228_v21 = vlaneseq (!%p150_p2)  ;;  %vm328_vm0 = vcmask (!%p150_p2), 130048  }
   0x6   : > { %153 = sbr.rel (%p150_p2) target bundleno = 525 (0x20d), region = 32  ;;  %827 = vset.pattern.permute.xlu1 (!%p150_p2), %v838_v2  ;;  %826 = vset.pattern.permute.xlu0 (!%p150_p2), %v838_v2  ;;  %p179_p3 = scmp.lt.s32.totalorder (!%p150_p2), %s723_s14, 31  ;;  %v809_v3 = vpack.c.bf16 (!%p150_p2), %v327_v1, %v326_v0  ;;  %v840_v25 = vmov (!%p150_p2), 0.0  }
   0x7   : > { %v881_v22 = vand.u32 (!%p150_p2), 127, %v228_v21 }
   0x8   : > { %810 = vmatprep.subr.bf16.mxu0 (!%p150_p2), %v809_v3  ;;  %813 = vmatprep.subr.bf16.mxu1 (!%p150_p2), %v809_v3 }
   0x9   : > { %812 = vmatpush3.bf16.msra.mxu0 (!%p150_p2), %v809_v3  ;;  %814 = vmatpush3.bf16.msra.mxu1 (!%p150_p2), %v809_v3 }
   0xd   : > { %s1019_s14 = smov (!%p179_p3, %s723_s14), 31 }
   0xe   : > { %s875_s19 = sshll.u32 %s1019_s14, 3 }
   0xf   : > { %s182_s22 = scalar_lea.vmem %s1014_s0, %s875_s19  ;;  %s946_s25 = scalar_lea.vmem %s1015_s1, %s875_s19 }
  0x10   : > { %v197_v4 = vld [vmem:[%s182_s22 + $0x8] sm:$0xff]  ;;  %v196_v5 = vld [vmem:[%s182_s22] sm:$0xff]  ;;  %v206_v8 = vld [vmem:[%s182_s22 + $0x50] sm:$0xff]  ;;  %s953_s28 = scalar_lea.vmem %s1017_s3, %s875_s19 }
  0x11   : > { %234 = vperm.xlu1 %827, %v197_v4   ;;  %231 = vperm.xlu0 %826, %v196_v5   ;;  %v205_v6 = vld [vmem:[%s182_s22 + $0x48] sm:$0xff]  ;;  %v204_v7 = vld [vmem:[%s182_s22 + $0x40] sm:$0xff]  ;;  %v198_v9 = vld [vmem:[%s182_s22 + $0x10] sm:$0xff] }
  0x12   : > { %v207_v10 = vld [vmem:[%s182_s22 + $0x58] sm:$0xff]  ;;  %v208_v12 = vld [vmem:[%s182_s22 + $0x60] sm:$0xff]  ;;  %v209_v14 = vld [vmem:[%s182_s22 + $0x68] sm:$0xff] }
  0x13   : > { %v199_v11 = vld [vmem:[%s182_s22 + $0x18] sm:$0xff]  ;;  %v200_v13 = vld [vmem:[%s182_s22 + $0x20] sm:$0xff]  ;;  %v201_v15 = vld [vmem:[%s182_s22 + $0x28] sm:$0xff] }
  0x14   : > { %v210_v16 = vld [vmem:[%s182_s22 + $0x70] sm:$0xff]  ;;  %v211_v18 = vld [vmem:[%s182_s22 + $0x78] sm:$0xff] }
  0x15   : > { %258 = vperm.xlu1 %827, %v205_v6   ;;  %255 = vperm.xlu0 %826, %v204_v7   ;;  %v202_v17 = vld [vmem:[%s182_s22 + $0x30] sm:$0xff]  ;;  %v203_v19 = vld [vmem:[%s182_s22 + $0x38] sm:$0xff] }
  0x19   : > { %261 = vperm.xlu1 %827, %v206_v8   ;;  %237 = vperm.xlu0 %826, %v198_v9   ;;  %v213_v8 = vld [vmem:[%s946_s25 + $0x8] sm:$0xff] }
  0x1d   : > { %264 = vperm.xlu1 %827, %v207_v10   ;;  %240 = vperm.xlu0 %826, %v199_v11   ;;  %v221_v11 = vld [vmem:[%s946_s25 + $0x48] sm:$0xff] }
  0x21   : > { %267 = vperm.xlu1 %827, %v208_v12   ;;  %243 = vperm.xlu0 %826, %v200_v13   ;;  %v220_v13 = vld [vmem:[%s946_s25 + $0x40] sm:$0xff] }
  0x25   : > { %270 = vperm.xlu1 %827, %v209_v14   ;;  %246 = vperm.xlu0 %826, %v201_v15  }
  0x29   : > { %273 = vperm.xlu1 %827, %v210_v16   ;;  %249 = vperm.xlu0 %826, %v202_v17  }
  0x2d   : > { %276 = vperm.xlu1 %827, %v211_v18   ;;  %252 = vperm.xlu0 %826, %v203_v19   ;;  %v212_v18 = vld [vmem:[%s946_s25] sm:$0xff] }
  0x31   : > { %828 = vset.pattern.permute.xlu1 %v839_v20  ;;  %829 = vset.pattern.permute.xlu0 %v839_v20 }
  0x90   : > { %v235_v23 = vpop.permute.xlu1 %234  ;;  %v232_v24 = vpop.permute.xlu0 %231 }
  0x91   : > { %vm279_vm1 = vcmp.eq.s32.totalorder %v235_v23, %v881_v22  ;;  %vm278_vm2 = vcmp.eq.s32.totalorder %v232_v24, %v881_v22  ;;  %v214_v23 = vld [vmem:[%s946_s25 + $0x10] sm:$0xff]  ;;  %v215_v24 = vld [vmem:[%s946_s25 + $0x18] sm:$0xff] }
  0x92   : > { %v730_v26 = vsel %vm279_vm1, 1.0, %v840_v25  ;;  %v729_v27 = vsel %vm278_vm2, 1.0, %v840_v25 }
  0x93   : > { %785 = vmatprep.mubr.msk.f32.mxu0 %vm328_vm0, %v729_v27 }
  0x94   : > { %v259_v28 = vpop.permute.xlu1 %258  ;;  %786 = vmatmul.mubr.msk.f32.vlgmr.msra.gmra.mrb[0].mxu0 %vm328_vm0, %v730_v26  ;;  %v256_v29 = vpop.permute.xlu0 %255 }
  0x95   : > { %vm287_vm3 = vcmp.eq.s32.totalorder %v259_v28, %v881_v22  ;;  %vm286_vm4 = vcmp.eq.s32.totalorder %v256_v29, %v881_v22 }
  0x96   : > { %v738_v30 = vsel %vm287_vm3, 1.0, %v840_v25  ;;  %v737_v31 = vsel %vm286_vm4, 1.0, %v840_v25 }
  0x97   : > { %797 = vmatprep.mubr.msk.f32.mxu1 %vm328_vm0, %v737_v31  ;;  %v223_v31 = vld [vmem:[%s946_s25 + $0x58] sm:$0xff] }
  0x98   : > { %v262_v32 = vpop.permute.xlu1 %261  ;;  %798 = vmatmul.mubr.msk.f32.vlgmr.msra.gmra.mrb[0].mxu1 %vm328_vm0, %v738_v30  ;;  %v238_v33 = vpop.permute.xlu0 %237  ;;  %v222_v30 = vld [vmem:[%s946_s25 + $0x50] sm:$0xff] }
  0x99   : > { %vm288_vm5 = vcmp.eq.s32.totalorder %v262_v32, %v881_v22  ;;  %vm280_vm6 = vcmp.eq.s32.totalorder %v238_v33, %v881_v22 }
  0x9a   : > { %v739_v34 = vsel %vm288_vm5, 1.0, %v840_v25  ;;  %v731_v35 = vsel %vm280_vm6, 1.0, %v840_v25 }
  0x9b   : > { %788 = vmatprep.mubr.msk.f32.mxu0 %vm328_vm0, %v731_v35  ;;  %800 = vmatprep.mubr.msk.f32.mxu1 %vm328_vm0, %v739_v34 }
  0x9c   : > { %v265_v36 = vpop.permute.xlu1 %264  ;;  %v241_v37 = vpop.permute.xlu0 %240 }
  0x9d   : > { %vm289_vm7 = vcmp.eq.s32.totalorder %v265_v36, %v881_v22  ;;  %vm281_vm8 = vcmp.eq.s32.totalorder %v241_v37, %v881_v22 }
  0x9e   : > { %v740_v38 = vsel %vm289_vm7, 1.0, %v840_v25  ;;  %v732_v39 = vsel %vm281_vm8, 1.0, %v840_v25 }
  0x9f   : > { %789 = vmatmul.mubr.msk.f32.gmra.mrb[2].mxu0 %vm328_vm0, %v732_v39  ;;  %801 = vmatmul.mubr.msk.f32.gmra.mrb[2].mxu1 %vm328_vm0, %v740_v38  ;;  %v216_v38 = vld [vmem:[%s946_s25 + $0x20] sm:$0xff]  ;;  %v217_v39 = vld [vmem:[%s946_s25 + $0x28] sm:$0xff] }
  0xa0   : > { %v268_v40 = vpop.permute.xlu1 %267  ;;  %v244_v41 = vpop.permute.xlu0 %243 }
  0xa1   : > { %vm290_vm9 = vcmp.eq.s32.totalorder %v268_v40, %v881_v22  ;;  %vm282_vm10 = vcmp.eq.s32.totalorder %v244_v41, %v881_v22 }
  0xa2   : > { %v741_v42 = vsel %vm290_vm9, 1.0, %v840_v25  ;;  %v733_v43 = vsel %vm282_vm10, 1.0, %v840_v25 }
  0xa3   : > { %791 = vmatprep.mubr.msk.f32.mxu0 %vm328_vm0, %v733_v43  ;;  %803 = vmatprep.mubr.msk.f32.mxu1 %vm328_vm0, %v741_v42 }
  0xa4   : > { %v271_v44 = vpop.permute.xlu1 %270  ;;  %v247_v45 = vpop.permute.xlu0 %246 }
  0xa5   : > { %vm291_vm11 = vcmp.eq.s32.totalorder %v271_v44, %v881_v22  ;;  %vm283_vm12 = vcmp.eq.s32.totalorder %v247_v45, %v881_v22 }
  0xa6   : > { %v742_v46 = vsel %vm291_vm11, 1.0, %v840_v25  ;;  %v734_v47 = vsel %vm283_vm12, 1.0, %v840_v25 }
  0xa7   : > { %792 = vmatmul.mubr.msk.f32.gmra.mrb[4].mxu0 %vm328_vm0, %v734_v47  ;;  %804 = vmatmul.mubr.msk.f32.gmra.mrb[4].mxu1 %vm328_vm0, %v742_v46  ;;  %v224_v46 = vld [vmem:[%s946_s25 + $0x60] sm:$0xff]  ;;  %v225_v47 = vld [vmem:[%s946_s25 + $0x68] sm:$0xff] }
  0xa8   : > { %v274_v48 = vpop.permute.xlu1 %273  ;;  %v250_v49 = vpop.permute.xlu0 %249 }
  0xa9   : > { %vm292_vm13 = vcmp.eq.s32.totalorder %v274_v48, %v881_v22  ;;  %vm284_vm14 = vcmp.eq.s32.totalorder %v250_v49, %v881_v22 }
  0xaa   : > { %v743_v50 = vsel %vm292_vm13, 1.0, %v840_v25  ;;  %v735_v51 = vsel %vm284_vm14, 1.0, %v840_v25 }
  0xab   : > { %794 = vmatprep.mubr.msk.f32.mxu0 %vm328_vm0, %v735_v51  ;;  %806 = vmatprep.mubr.msk.f32.mxu1 %vm328_vm0, %v743_v50 }
  0xac   : > { %v277_v52 = vpop.permute.xlu1 %276  ;;  %v253_v53 = vpop.permute.xlu0 %252 }
  0xad   : > { %vm293_vm15 = vcmp.eq.s32.totalorder %v277_v52, %v881_v22  ;;  %vm285_vm1 = vcmp.eq.s32.totalorder %v253_v53, %v881_v22 }
  0xae   : > { %v744_v54 = vsel %vm293_vm15, 1.0, %v840_v25  ;;  %v736_v55 = vsel %vm285_vm1, 1.0, %v840_v25 }
  0xaf   : > { %795 = vmatmul.mubr.msk.f32.gmra.mrb[6].mxu0 %vm328_vm0, %v736_v55  ;;  %807 = vmatmul.mubr.msk.f32.gmra.mrb[6].mxu1 %vm328_vm0, %v744_v54  ;;  %v218_v54 = vld [vmem:[%s946_s25 + $0x30] sm:$0xff]  ;;  %v219_v55 = vld [vmem:[%s946_s25 + $0x38] sm:$0xff] }
 0x167   : > { %v787_v56 = vpop.f32.mrb[0].mxu0 }
 0x168   : > { %529 = vperm.xlu1 %828, %v787_v56   ;;  %v443_v57 = vpop.f32.mrb[1].mxu0 }
 0x16b   : > { %v799_v58 = vpop.f32.mrb[0].mxu1 }
 0x16c   : > { %569 = vperm.xlu0 %829, %v799_v58   ;;  %v483_v59 = vpop.f32.mrb[1].mxu1 }
 0x16d   : > { %564 = vperm.xlu1 %828, %v483_v59  }
 0x170   : > { %524 = vperm.xlu0 %829, %v443_v57  }
 0x172   : > { %v790_v60 = vpop.f32.mrb[2].mxu0  ;;  %v915_v61 = vpop.f32.mrb[2].mxu1 }
 0x173   : > { %v453_v62 = vpop.f32.mrb[3].mxu0  ;;  %v493_v63 = vpop.f32.mrb[3].mxu1 }
 0x174   : > { %539 = vperm.xlu0 %829, %v790_v60   ;;  %534 = vperm.xlu1 %828, %v453_v62  }
 0x178   : > { %579 = vperm.xlu0 %829, %v915_v61   ;;  %574 = vperm.xlu1 %828, %v493_v63  }
 0x17a   : > { %v918_v0 = vpop.f32.mrb[4].mxu0  ;;  %v920_v1 = vpop.f32.mrb[4].mxu1 }
 0x17b   : > { %v922_v2 = vpop.f32.mrb[5].mxu0  ;;  %v924_v3 = vpop.f32.mrb[5].mxu1 }
 0x17c   : > { %549 = vperm.xlu0 %829, %v918_v0   ;;  %544 = vperm.xlu1 %828, %v922_v2  }
 0x180   : > { %589 = vperm.xlu0 %829, %v920_v1   ;;  %584 = vperm.xlu1 %828, %v924_v3  }
 0x182   : > { %v930_v4 = vpop.f32.mrb[6].mxu0  ;;  %v932_v5 = vpop.f32.mrb[6].mxu1 }
 0x183   : > { %v934_v6 = vpop.f32.mrb[7].mxu0  ;;  %v936_v7 = vpop.f32.mrb[7].mxu1 }
 0x184   : > { %559 = vperm.xlu0 %829, %v930_v4   ;;  %554 = vperm.xlu1 %828, %v934_v6  }
 0x188   : > { %599 = vperm.xlu0 %829, %v932_v5   ;;  %594 = vperm.xlu1 %828, %v936_v7  }
 0x1e7   : > { %v530_v9 = vpop.permute.xlu1 %529 }
 0x1e8   : > { %v603_v10 = vmul.f32 %v530_v9, %v213_v8 }
 0x1ea   : > { %v619_v12 = vadd.f32 %v787_v56, %v603_v10 }
 0x1eb   : > { %v570_v14 = vpop.permute.xlu0 %569 }
 0x1ec   : > { %635 = vst.msk [vmem:[%s953_s28 + $0x8] sm:$0xff] %vm328_vm0, %v619_v12  ;;  %v611_v15 = vmul.f32 %v570_v14, %v221_v11  ;;  %v565_v16 = vpop.permute.xlu1 %564 }
 0x1ed   : > { %v610_v17 = vmul.f32 %v565_v16, %v220_v13 }
 0x1ee   : > { %v627_v19 = vadd.f32 %v799_v58, %v611_v15 }
 0x1ef   : > { %v626_v20 = vadd.f32 %v610_v17, %v483_v59  ;;  %v525_v21 = vpop.permute.xlu0 %524 }
 0x1f0   : > { %643 = vst.msk [vmem:[%s953_s28 + $0x48] sm:$0xff] %vm328_vm0, %v627_v19  ;;  %v602_v22 = vmul.f32 %v525_v21, %v212_v18 }
 0x1f1   : > { %642 = vst.msk [vmem:[%s953_s28 + $0x40] sm:$0xff] %vm328_vm0, %v626_v20 }
 0x1f2   : > { %v618_v25 = vadd.f32 %v602_v22, %v443_v57 }
 0x1f3   : > { %v535_v26 = vpop.permute.xlu1 %534  ;;  %v540_v27 = vpop.permute.xlu0 %539 }
 0x1f4   : > { %634 = vst.msk [vmem:[%s953_s28] sm:$0xff] %vm328_vm0, %v618_v25  ;;  %v604_v28 = vmul.f32 %v535_v26, %v214_v23  ;;  %v605_v29 = vmul.f32 %v540_v27, %v215_v24 }
 0x1f6   : > { %v620_v32 = vadd.f32 %v604_v28, %v453_v62  ;;  %v621_v33 = vadd.f32 %v790_v60, %v605_v29  ;;  %v226_v62 = vld [vmem:[%s946_s25 + $0x70] sm:$0xff] }
 0x1f7   : > { %v575_v34 = vpop.permute.xlu1 %574  ;;  %v580_v35 = vpop.permute.xlu0 %579 }
 0x1f8   : > { %636 = vst.msk [vmem:[%s953_s28 + $0x10] sm:$0xff] %vm328_vm0, %v620_v32  ;;  %637 = vst.msk [vmem:[%s953_s28 + $0x18] sm:$0xff] %vm328_vm0, %v621_v33  ;;  %v612_v36 = vmul.f32 %v575_v34, %v222_v30  ;;  %v613_v37 = vmul.f32 %v580_v35, %v223_v31 }
 0x1fa   : > { %v628_v40 = vadd.f32 %v612_v36, %v493_v63  ;;  %v629_v41 = vadd.f32 %v915_v61, %v613_v37  ;;  %v227_v63 = vld [vmem:[%s946_s25 + $0x78] sm:$0xff] }
 0x1fb   : > { %v545_v42 = vpop.permute.xlu1 %544  ;;  %v550_v43 = vpop.permute.xlu0 %549 }
 0x1fc   : > { %644 = vst.msk [vmem:[%s953_s28 + $0x50] sm:$0xff] %vm328_vm0, %v628_v40  ;;  %645 = vst.msk [vmem:[%s953_s28 + $0x58] sm:$0xff] %vm328_vm0, %v629_v41  ;;  %v606_v44 = vmul.f32 %v545_v42, %v216_v38  ;;  %v607_v45 = vmul.f32 %v550_v43, %v217_v39 }
 0x1fe   : > { %v622_v48 = vadd.f32 %v606_v44, %v922_v2  ;;  %v623_v49 = vadd.f32 %v918_v0, %v607_v45 }
 0x1ff   : > { %v585_v50 = vpop.permute.xlu1 %584  ;;  %v590_v51 = vpop.permute.xlu0 %589 }
 0x200   : > { %638 = vst.msk [vmem:[%s953_s28 + $0x20] sm:$0xff] %vm328_vm0, %v622_v48  ;;  %639 = vst.msk [vmem:[%s953_s28 + $0x28] sm:$0xff] %vm328_vm0, %v623_v49  ;;  %v614_v52 = vmul.f32 %v585_v50, %v224_v46  ;;  %v615_v53 = vmul.f32 %v590_v51, %v225_v47 }
 0x202   : > { %v630_v56 = vadd.f32 %v614_v52, %v924_v3  ;;  %v631_v57 = vadd.f32 %v920_v1, %v615_v53 }
 0x203   : > { %v555_v58 = vpop.permute.xlu1 %554  ;;  %v560_v59 = vpop.permute.xlu0 %559 }
 0x204   : > { %646 = vst.msk [vmem:[%s953_s28 + $0x60] sm:$0xff] %vm328_vm0, %v630_v56  ;;  %647 = vst.msk [vmem:[%s953_s28 + $0x68] sm:$0xff] %vm328_vm0, %v631_v57  ;;  %v608_v60 = vmul.f32 %v555_v58, %v218_v54  ;;  %v609_v61 = vmul.f32 %v560_v59, %v219_v55 }
 0x206   : > { %v624_v0 = vadd.f32 %v608_v60, %v934_v6  ;;  %v625_v2 = vadd.f32 %v930_v4, %v609_v61 }
 0x207   : > { %v595_v8 = vpop.permute.xlu1 %594  ;;  %v600_v3 = vpop.permute.xlu0 %599 }
 0x208   : > { %640 = vst.msk [vmem:[%s953_s28 + $0x30] sm:$0xff] %vm328_vm0, %v624_v0  ;;  %641 = vst.msk [vmem:[%s953_s28 + $0x38] sm:$0xff] %vm328_vm0, %v625_v2  ;;  %v616_v1 = vmul.f32 %v595_v8, %v226_v62  ;;  %v617_v9 = vmul.f32 %v600_v3, %v227_v63 }
 0x20a   : > { %v632_v10 = vadd.f32 %v616_v1, %v936_v7  ;;  %v633_v11 = vadd.f32 %v932_v5, %v617_v9 }
 0x20c   : > { %648 = vst.msk [vmem:[%s953_s28 + $0x70] sm:$0xff] %vm328_vm0, %v632_v10  ;;  %649 = vst.msk [vmem:[%s953_s28 + $0x78] sm:$0xff] %vm328_vm0, %v633_v11 }
 0x20d PF: > { %s13_s12 = sadd.s32 1, %s836_s12  }
 0x20e   : > { %p10_p4 = scmp.ge.s32.totalorder %s13_s12, 4  }
 0x210   :  { %12 = sbr.rel (!%p10_p4) target bundleno = 1 (0x1), region = 65 }

// kernel: jj_norm.2
= control target key start
LH: loop header
LB: loop body
LE: loop exit
PB: predicated region body
PF: predicated region fallthrough
CT: control target
= control target key end

     0   :  { %s882_s12 = smov 0   ;;  %s884_s13 = smov 0   ;;  %s1017_s0 = inlined_call_operand.vmem [shape: s32[1,256], index: 0, kind: input, shape index: {}]   ;;  %s1018_s1 = inlined_call_operand.vmem [shape: f32[256,16], index: 1, kind: input, shape index: {}]   ;;  %s1019_s2 = inlined_call_operand.vmem [shape: f32[2,16,16], index: 2, kind: output, shape index: {0}]   ;;  %s1020_s3 = inlined_call_operand.vmem [shape: f32[2,16,2], index: 3, kind: output, shape index: {1}]  }
   0x1   :  { %s886_s14 = smov 0  }
   0x2 LB: > { %s26_s15 = sadd.s32 1, %s854_s13  ;;  %p622_p0 = scmp.ge.s32.totalorder %s858_s14, 1  ;;  %s858_s14 = sphi %s886_s14, %s14_s14   ;;  %s854_s13 = sphi %s884_s13, %s1022_s13   ;;  %s850_s12 = sphi %s882_s12, %s1021_s12  }
   0x3   : > { %p28_p1 = scmp.ge.s32.totalorder %s26_s15, 2  ;;  %p169_p2 = scmp.lt.s32.totalorder %s858_s14, 3 }
   0x5   : > { %s1024_s15 = smov (%p28_p1, %s26_s15), 0  ;;  %p170_p3 = pnand %p622_p0, %p169_p2 }
   0x6   : > { %s623_s16 = sshll.u32 (!%p170_p3), %s850_s12, 4  ;;  %vm230_vm0 = vcmask (!%p170_p3), 130048   ;;  %p204_p5 = scmp.lt.s32.totalorder (!%p170_p3), %s850_s12, 1  ;;  %v253_v55 = vlaneseq (!%p170_p3)  ;;  %v860_v60 = vmov (!%p170_p3), 1.0   ;;  %v861_v61 = vmov (!%p170_p3), 0.0  }
   0x7   : > { %173 = sbr.rel (%p170_p3) target bundleno = 418 (0x1a2), region = 28  ;;  %p210_p4 = scmp.lt.s32.totalorder (!%p170_p3), %s623_s16, 31  ;;  %vm233_vm3 = vcmask (!%p170_p3), 15360  }
   0x8   : > { %v254_v57 = vshrl.u32 (!%p170_p3), %v253_v55, 7  ;;  %v332_v62 = vand.u32 (!%p170_p3), 127, %v253_v55 }
   0xa   : > { %v947_v59 = vadd.s32 (!%p170_p3), 8, %v254_v57  ;;  %vm333_vm4 = vcmp.eq.s32.totalorder (!%p170_p3), %v332_v62, 0 }
   0xe   : > { %s1026_s16 = smov (!%p210_p4, %s623_s16), 31  ;;  %s1028_s12 = smov (!%p204_p5, %s850_s12), 1 }
   0xf   : > { %s624_s17 = sshll.u32 %s1026_s16, 3  ;;  %s206_s23 = scalar_lea.vmem %s1017_s0, %s1028_s12 }
  0x10   : > { %s906_s20 = scalar_lea.vmem %s1018_s1, %s624_s17  ;;  %v945_v58 = vld [vmem:[%s206_s23] ss:$0 sm:$0xff]  ;;  %s638_s24 = sshll.u32 %s1028_s12, 4 }
  0x11   : > { %v239_v0 = vld [vmem:[%s906_s20 + $0x10] sm:$0xff]  ;;  %v237_v1 = vld [vmem:[%s906_s20] sm:$0xff]  ;;  %v240_v2 = vld [vmem:[%s906_s20 + $0x18] sm:$0xff]  ;;  %vm260_vm1 = vcmp.eq.s32.totalorder %v945_v58, %v254_v57  ;;  %s953_s27 = scalar_lea.vmem %s1019_s2, %s638_s24  ;;  %vm261_vm2 = vcmp.eq.s32.totalorder %v945_v58, %v947_v59  ;;  %s970_s30 = scalar_lea.vmem %s1020_s3, %s638_s24 }
  0x12   : > { %v268_v3 = vmul.f32 %v239_v0, %v239_v0  ;;  %v266_v4 = vmul.f32 %v237_v1, %v237_v1  ;;  %v269_v5 = vmul.f32 %v240_v2, %v240_v2  ;;  %v238_v6 = vld [vmem:[%s906_s20 + $0x8] sm:$0xff]  ;;  %v241_v9 = vld [vmem:[%s906_s20 + $0x20] sm:$0xff]  ;;  %v244_v16 = vld [vmem:[%s906_s20 + $0x38] sm:$0xff]  ;;  %v750_v47 = vpack.c.bf16 %v240_v2, %v239_v0  ;;  %708 = vmatprep.mubr.msk.f32.mxu0 %vm260_vm1, %v860_v60 }
  0x13   : > { %v267_v7 = vmul.f32 %v238_v6, %v238_v6  ;;  %v242_v8 = vld [vmem:[%s906_s20 + $0x28] sm:$0xff]  ;;  %v270_v15 = vmul.f32 %v241_v9, %v241_v9  ;;  %v243_v17 = vld [vmem:[%s906_s20 + $0x30] sm:$0xff]  ;;  %v273_v20 = vmul.f32 %v244_v16, %v244_v16  ;;  %v245_v23 = vld [vmem:[%s906_s20 + $0x40] sm:$0xff]  ;;  %v746_v42 = vpack.c.bf16 %v238_v6, %v237_v1  ;;  %743 = vmatprep.mubr.msk.f32.mxu1 %vm260_vm1, %v860_v60 }
  0x14   : > { %v289_v10 = vsel %vm230_vm0, %v268_v3, 0.0  ;;  %v283_v11 = vsel %vm230_vm0, %v266_v4, 0.0  ;;  %v292_v12 = vsel %vm230_vm0, %v269_v5, 0.0  ;;  %v271_v14 = vmul.f32 %v242_v8, %v242_v8  ;;  %v246_v22 = vld [vmem:[%s906_s20 + $0x48] sm:$0xff]  ;;  %v248_v28 = vld [vmem:[%s906_s20 + $0x58] sm:$0xff]  ;;  %v247_v29 = vld [vmem:[%s906_s20 + $0x50] sm:$0xff] }
  0x15   : > { %290 = vadd.xlane.f32.xlu1 %v289_v10  ;;  %284 = vadd.xlane.f32.xlu0 %v283_v11  ;;  %v286_v13 = vsel %vm230_vm0, %v267_v7, 0.0  ;;  %v295_v19 = vsel %vm230_vm0, %v270_v15, 0.0  ;;  %v272_v21 = vmul.f32 %v243_v17, %v243_v17  ;;  %v304_v24 = vsel %vm230_vm0, %v273_v20, 0.0  ;;  %v250_v34 = vld [vmem:[%s906_s20 + $0x68] sm:$0xff]  ;;  %v249_v35 = vld [vmem:[%s906_s20 + $0x60] sm:$0xff]  ;;  %v252_v40 = vld [vmem:[%s906_s20 + $0x78] sm:$0xff] }
  0x16   : > { %v298_v18 = vsel %vm230_vm0, %v271_v14, 0.0  ;;  %v275_v26 = vmul.f32 %v246_v22, %v246_v22  ;;  %v274_v27 = vmul.f32 %v245_v23, %v245_v23  ;;  %v277_v32 = vmul.f32 %v248_v28, %v248_v28  ;;  %v251_v41 = vld [vmem:[%s906_s20 + $0x70] sm:$0xff]  ;;  %747 = vmatprep.subr.bf16.mxu0 %v746_v42  ;;  %232 = vst.msk [vmem:[%s953_s27 + $0x8] sm:$0xff] %vm230_vm0, %v861_v61 }
  0x17   : > { %v301_v25 = vsel %vm230_vm0, %v272_v21, 0.0  ;;  %v276_v33 = vmul.f32 %v247_v29, %v247_v29  ;;  %v279_v38 = vmul.f32 %v250_v34, %v250_v34  ;;  %v278_v39 = vmul.f32 %v249_v35, %v249_v35  ;;  %749 = vmatpush3.bf16.msra.mxu0 %v746_v42  ;;  %231 = vst.msk [vmem:[%s953_s27] sm:$0xff] %vm230_vm0, %v861_v61 }
  0x18   : > { %v310_v30 = vsel %vm230_vm0, %v275_v26, 0.0  ;;  %v307_v31 = vsel %vm230_vm0, %v274_v27, 0.0  ;;  %v316_v36 = vsel %vm230_vm0, %v277_v32, 0.0  ;;  %v281_v45 = vmul.f32 %v252_v40, %v252_v40  ;;  %751 = vmatprep.subr.bf16.mxu0 %v750_v47  ;;  %235 = vst.msk [vmem:[%s970_s30 + $0x8] sm:$0xff] %vm233_vm3, %v861_v61  ;;  %234 = vst.msk [vmem:[%s970_s30] sm:$0xff] %vm233_vm3, %v861_v61 }
  0x19   : > { %293 = vadd.xlane.f32.xlu1 %v292_v12  ;;  %287 = vadd.xlane.f32.xlu0 %v286_v13  ;;  %v313_v37 = vsel %vm230_vm0, %v276_v33, 0.0  ;;  %v322_v43 = vsel %vm230_vm0, %v279_v38, 0.0  ;;  %v319_v44 = vsel %vm230_vm0, %v278_v39, 0.0  ;;  %v280_v46 = vmul.f32 %v251_v41, %v251_v41 }
  0x1a   : > { %v328_v48 = vsel %vm230_vm0, %v281_v45, 0.0  ;;  %v754_v50 = vpack.c.bf16 %v242_v8, %v241_v9  ;;  %v758_v51 = vpack.c.bf16 %v244_v16, %v243_v17  ;;  %v762_v52 = vpack.c.bf16 %v246_v22, %v245_v23 }
  0x1b   : > { %v325_v49 = vsel %vm230_vm0, %v280_v46, 0.0  ;;  %753 = vmatpush3.bf16.msra.mxu0 %v750_v47  ;;  %v766_v53 = vpack.c.bf16 %v248_v28, %v247_v29  ;;  %v770_v54 = vpack.c.bf16 %v250_v34, %v249_v35  ;;  %v774_v56 = vpack.c.bf16 %v252_v40, %v251_v41 }
  0x1c   : > { %755 = vmatprep.subr.bf16.mxu0 %v754_v50 }
  0x1d   : > { %299 = vadd.xlane.f32.xlu1 %v298_v18  ;;  %296 = vadd.xlane.f32.xlu0 %v295_v19  ;;  %v351_v39 = vld [vmem:[%s953_s27 + $0x8] sm:$0xff] }
  0x1e   : > { %v350_v40 = vld [vmem:[%s953_s27] sm:$0xff] }
  0x1f   : > { %757 = vmatpush3.bf16.msra.mxu0 %v754_v50  ;;  %v432_v45 = vld [vmem:[%s970_s30 + $0x8] sm:$0xff]  ;;  %v431_v46 = vld [vmem:[%s970_s30] sm:$0xff] }
  0x20   : > { %759 = vmatprep.subr.bf16.mxu0 %v758_v51 }
  0x21   : > { %305 = vadd.xlane.f32.xlu1 %v304_v24  ;;  %302 = vadd.xlane.f32.xlu0 %v301_v25 }
  0x23   : > { %761 = vmatpush3.bf16.msra.mxu0 %v758_v51 }
  0x24   : > { %763 = vmatprep.subr.bf16.mxu0 %v762_v52 }
  0x25   : > { %311 = vadd.xlane.f32.xlu1 %v310_v30  ;;  %308 = vadd.xlane.f32.xlu0 %v307_v31 }
  0x27   : > { %765 = vmatpush3.bf16.msra.mxu0 %v762_v52 }
  0x28   : > { %767 = vmatprep.subr.bf16.mxu0 %v766_v53 }
  0x29   : > { %317 = vadd.xlane.f32.xlu1 %v316_v36  ;;  %314 = vadd.xlane.f32.xlu0 %v313_v37 }
  0x2b   : > { %769 = vmatpush3.bf16.msra.mxu0 %v766_v53 }
  0x2c   : > { %771 = vmatprep.subr.bf16.mxu0 %v770_v54 }
  0x2d   : > { %323 = vadd.xlane.f32.xlu1 %v322_v43  ;;  %320 = vadd.xlane.f32.xlu0 %v319_v44 }
  0x2f   : > { %773 = vmatpush3.bf16.msra.mxu0 %v770_v54 }
  0x30   : > { %775 = vmatprep.subr.bf16.mxu0 %v774_v56 }
  0x31   : > { %329 = vadd.xlane.f32.xlu1 %v328_v48  ;;  %326 = vadd.xlane.f32.xlu0 %v325_v49 }
  0x33   : > { %777 = vmatpush3.bf16.msra.mxu0 %v774_v56 }
  0x36   : > { %709 = vmatmul.mubr.msk.f32.vlgmr.msra.gmra.mrb[0].mxu0 %vm261_vm2, %v860_v60 }
  0xa2   : > { %v291_v63 = vpop.xlane.xlu1 %290  ;;  %v285_v0 = vpop.xlane.xlu0 %284 }
  0xa3   : > { %v336_v3 = vsel %vm333_vm4, 1.0, %v291_v63  ;;  %v334_v4 = vsel %vm333_vm4, 1.0, %v285_v0 }
  0xa6   : > { %v294_v1 = vpop.xlane.xlu1 %293  ;;  %v288_v2 = vpop.xlane.xlu0 %287 }
  0xa7   : > { %v337_v5 = vsel %vm333_vm4, 1.0, %v294_v1  ;;  %v335_v6 = vsel %vm333_vm4, 1.0, %v288_v2 }
  0xa8   : > { %v778_v7 = vpack.c.bf16 %v335_v6, %v334_v4  ;;  %v782_v8 = vpack.c.bf16 %v337_v5, %v336_v3 }
  0xaa   : > { %779 = vmatprep.subr.bf16.mxu1 %v778_v7  ;;  %v300_v9 = vpop.xlane.xlu1 %299  ;;  %v297_v10 = vpop.xlane.xlu0 %296 }
  0xab   : > { %781 = vmatpush3.bf16.msra.mxu1 %v778_v7  ;;  %v339_v11 = vsel %vm333_vm4, 1.0, %v300_v9  ;;  %v338_v12 = vsel %vm333_vm4, 1.0, %v297_v10 }
  0xac   : > { %783 = vmatprep.subr.bf16.mxu1 %v782_v8  ;;  %v786_v13 = vpack.c.bf16 %v339_v11, %v338_v12 }
  0xae   : > { %v306_v14 = vpop.xlane.xlu1 %305  ;;  %v303_v15 = vpop.xlane.xlu0 %302 }
  0xaf   : > { %785 = vmatpush3.bf16.msra.mxu1 %v782_v8  ;;  %v341_v16 = vsel %vm333_vm4, 1.0, %v306_v14  ;;  %v340_v17 = vsel %vm333_vm4, 1.0, %v303_v15 }
  0xb0   : > { %787 = vmatprep.subr.bf16.mxu1 %v786_v13  ;;  %v790_v18 = vpack.c.bf16 %v341_v16, %v340_v17 }
  0xb2   : > { %v312_v19 = vpop.xlane.xlu1 %311  ;;  %v309_v20 = vpop.xlane.xlu0 %308 }
  0xb3   : > { %789 = vmatpush3.bf16.msra.mxu1 %v786_v13  ;;  %v343_v21 = vsel %vm333_vm4, 1.0, %v312_v19  ;;  %v342_v22 = vsel %vm333_vm4, 1.0, %v309_v20 }
  0xb4   : > { %791 = vmatprep.subr.bf16.mxu1 %v790_v18  ;;  %v794_v23 = vpack.c.bf16 %v343_v21, %v342_v22 }
  0xb6   : > { %v318_v24 = vpop.xlane.xlu1 %317  ;;  %v315_v25 = vpop.xlane.xlu0 %314 }
  0xb7   : > { %793 = vmatpush3.bf16.msra.mxu1 %v790_v18  ;;  %v345_v26 = vsel %vm333_vm4, 1.0, %v318_v24  ;;  %v344_v27 = vsel %vm333_vm4, 1.0, %v315_v25 }
  0xb8   : > { %795 = vmatprep.subr.bf16.mxu1 %v794_v23  ;;  %v798_v28 = vpack.c.bf16 %v345_v26, %v344_v27 }
  0xba   : > { %v324_v29 = vpop.xlane.xlu1 %323  ;;  %v321_v30 = vpop.xlane.xlu0 %320 }
  0xbb   : > { %797 = vmatpush3.bf16.msra.mxu1 %v794_v23  ;;  %v347_v31 = vsel %vm333_vm4, 1.0, %v324_v29  ;;  %v346_v32 = vsel %vm333_vm4, 1.0, %v321_v30 }
  0xbc   : > { %799 = vmatprep.subr.bf16.mxu1 %v798_v28  ;;  %v802_v33 = vpack.c.bf16 %v347_v31, %v346_v32 }
  0xbe   : > { %v330_v34 = vpop.xlane.xlu1 %329  ;;  %v327_v35 = vpop.xlane.xlu0 %326 }
  0xbf   : > { %801 = vmatpush3.bf16.msra.mxu1 %v798_v28  ;;  %v349_v36 = vsel %vm333_vm4, 1.0, %v330_v34  ;;  %v348_v37 = vsel %vm333_vm4, 1.0, %v327_v35 }
  0xc0   : > { %803 = vmatprep.subr.bf16.mxu1 %v802_v33  ;;  %v806_v38 = vpack.c.bf16 %v349_v36, %v348_v37 }
  0xc3   : > { %805 = vmatpush3.bf16.msra.mxu1 %v802_v33 }
  0xc4   : > { %807 = vmatprep.subr.bf16.mxu1 %v806_v38 }
  0xc7   : > { %809 = vmatpush3.bf16.msra.mxu1 %v806_v38 }
  0xca   : > { %744 = vmatmul.mubr.msk.f32.vlgmr.msra.gmra.mrb[0].mxu1 %vm261_vm2, %v860_v60 }
 0x109   : > { %v710_v41 = vpop.f32.mrb[0].mxu0 }
 0x10a   : > { %v428_v42 = vadd.f32 %v710_v41, %v351_v39  ;;  %v418_v43 = vpop.f32.mrb[1].mxu0 }
 0x10b   : > { %v427_v44 = vadd.f32 %v418_v43, %v350_v40 }
 0x10c   : > { %430 = vst.msk [vmem:[%s953_s27 + $0x8] sm:$0xff] %vm230_vm0, %v428_v42 }
 0x10d   : > { %429 = vst.msk [vmem:[%s953_s27] sm:$0xff] %vm230_vm0, %v427_v44 }
 0x19d   : > { %v745_v47 = vpop.f32.mrb[0].mxu1 }
 0x19e   : > { %v509_v48 = vadd.f32 %v745_v47, %v432_v45  ;;  %v499_v49 = vpop.f32.mrb[1].mxu1 }
 0x19f   : > { %v508_v50 = vadd.f32 %v499_v49, %v431_v46 }
 0x1a0   : > { %512 = vst.msk [vmem:[%s970_s30 + $0x8] sm:$0xff] %vm233_vm3, %v509_v48 }
 0x1a1   : > { %511 = vst.msk [vmem:[%s970_s30] sm:$0xff] %vm233_vm3, %v508_v50 }
 0x1a2 PF: > { %s14_s14 = sadd.s32 1, %s858_s14   ;;  %s1021_s12 = smov %s854_s13 }
 0x1a3   : > { %p11_p6 = scmp.ge.s32.totalorder %s14_s14, 4   ;;  %s1022_s13 = smov %s1024_s15 }
 0x1a5   :  { %13 = sbr.rel (!%p11_p6) target bundleno = 2 (0x2), region = 77 }

</bundles_post_ra>
